<compile_context>
chip_gen: v5e
topology: v5e:2x2
jax: 0.10.0
libtpu: 0.0.40
codegen_flags: <defaults>
</compile_context>

<pallas_src>
import jax
import jax.numpy as jnp
from jax.experimental import pallas as pl
from jax.experimental.pallas import tpu as pltpu


_SMALL_OUTPUT_BYTES = 1 << 20   # below this, XLA broadcast beats any kernel
_FORCE_SPLIT_BYTES = 2 << 20    # above this, force >=2 tiles (v7x dual-TC)


def _constant_input_kernel(const_ref, out_ref):
    # const_ref: (1, F)   learned constant, VMEM-resident across grid steps
    # out_ref:   (TB, F)  output rows of the current batch tile
    # NOTE: a stride-0 sublane-broadcast read (const_ref[pl.ds(0, TB, stride=0), :])
    # would skip the broadcast_in_dim fill, but the kernel is writeback-DMA
    # bound (VMEM fill >> HBM store bandwidth), so the simple form is kept.
    out_ref[...] = jnp.broadcast_to(const_ref[...], out_ref.shape)


def _tile_budget():
    """Per-generation (target_tile_bytes, vmem_limit_bytes)."""
    target = 4 * 1024 * 1024          # conservative: fits every default scope
    vmem_limit = None
    try:
        vmem_cap = pltpu.get_tpu_info().vmem_capacity_bytes
        if vmem_cap <= 64 * 1024 * 1024:
            # v7x-class: 64 MiB physical VMEM, ~3.2 TB/s HBM per TC. Bigger
            # tiles cut the fixed per-step overhead to <5%; 2 x 12 MiB output
            # buffers + the tiny constant stay under a 28 MiB scope.
            target, vmem_limit = 12 * 1024 * 1024, 28 * 1024 * 1024
        else:
            # v5e / v6e (128 MiB physical VMEM): 8 MiB tiles; raise the scope
            # above v5e's 16 MiB default so the double-buffered output fits.
            target, vmem_limit = 8 * 1024 * 1024, 24 * 1024 * 1024
    except Exception:
        pass  # unknown backend / interpret mode: keep conservative defaults
    return target, vmem_limit


def _round_up(x, m):
    return -(-x // m) * m


def _pick_batch_tile(batch, bytes_per_row, target_tile_bytes):
    total = batch * bytes_per_row
    if batch <= 8 or total <= _FORCE_SPLIT_BYTES:
        # Tiny batch (block must equal the full dim to stay (8,128)-legal) or
        # small total: one grid step writes everything.
        return batch
    # At least 2 tiles (give both v7x TensorCores store work), each tile
    # roughly target_tile_bytes, even tile count for balance.
    n_tiles = max(2, -(-total // target_tile_bytes))
    if n_tiles % 2:
        n_tiles += 1
    n_tiles = min(n_tiles, batch)
    tb = _round_up(-(-batch // n_tiles), 8)   # sublane (batch) dim multiple of 8
    if tb >= batch:
        if batch >= 16:
            tb = _round_up(-(-batch // 2), 8)  # force an (approximately) even split
        else:
            tb = batch
    return min(tb, batch)


def constant_input_forward(const_param, x, *, use_pallas=None, _tb_override=None):
    """Replicates ConstantInput.forward.

    const_param: (1, C, H, W) learned constant (NCHW).
    x:           any array whose leading dim is the batch size B (values unused).
    use_pallas:  None -> auto (XLA broadcast for tiny / lane-unfriendly configs),
                 True / False -> force the Pallas / XLA path.
    returns:     (B, C, H, W) = const_param repeated along batch.
    """
    batch = int(x.shape[0])
    _, C, H, W = const_param.shape
    feat = C * H * W
    itemsize = jnp.dtype(const_param.dtype).itemsize
    bytes_per_row = feat * itemsize
    total_bytes = batch * bytes_per_row

    target_tile_bytes, vmem_limit = _tile_budget()

    # Guards: non-128-multiple feature dims degrade every store to masked
    # vst.msk partial stores; rows fatter than one tile can't be batch-tiled.
    lane_ok = (feat % 128 == 0) and (bytes_per_row <= target_tile_bytes)
    small = total_bytes < _SMALL_OUTPUT_BYTES

    take_xla = (use_pallas is False) or (not lane_ok) or (use_pallas is None and small)
    if take_xla:
        # Same math via XLA's broadcast — strictly faster for tiny outputs and
        # the safe path for unaligned / oversized feature dims.
        return jnp.broadcast_to(const_param, (batch, C, H, W))

    # Lane-dense flat view: last dim = C*H*W (1024 for the example config).
    const_flat = const_param.reshape(1, feat)

    tb = _tb_override or _pick_batch_tile(batch, bytes_per_row, target_tile_bytes)
    grid = (pl.cdiv(batch, tb),)

    grid_spec = pltpu.PrefetchScalarGridSpec(
        num_scalar_prefetch=0,
        grid=grid,
        in_specs=[
            # Constant index_map -> same block every step -> stays resident in
            # VMEM (no redundant HBM->VMEM traffic). Single-buffering it via
            # pipeline_mode would save only ~one extra 4 KiB buffer; skipped.
            pl.BlockSpec((1, feat), lambda b: (0, 0)),
        ],
        out_specs=pl.BlockSpec((tb, feat), lambda b: (b, 0)),
    )

    out_flat = pl.pallas_call(
        _constant_input_kernel,
        out_shape=jax.ShapeDtypeStruct((batch, feat), const_param.dtype),
        grid_spec=grid_spec,
        compiler_params=pltpu.CompilerParams(
            # Independent store work per batch tile -> shard across TCs.
            dimension_semantics=("parallel",),
            vmem_limit_bytes=vmem_limit,
        ),
        cost_estimate=pl.CostEstimate(
            flops=0,
            transcendentals=0,
            bytes_accessed=total_bytes + bytes_per_row,  # pure-bandwidth kernel
        ),
    )(const_flat)

    return out_flat.reshape(batch, C, H, W)


if __name__ == "__main__":
    key = jax.random.PRNGKey(0)
    k_param, k_x = jax.random.split(key)

    # Module config: channel=4, size=16 (w=-1 -> square constant), batch=2.
    channel, size, batch = 4, 16, 2
    const_param = jax.random.normal(
        k_param, (1, channel, size, size), dtype=jnp.float32
    )
    x = jax.random.normal(k_x, (batch, channel, size, size), dtype=jnp.float32)
    ref = jnp.broadcast_to(const_param, (batch, channel, size, size))

    # 1) Pallas path (forced, so the kernel itself is exercised at this size).
    out = jax.block_until_ready(
        constant_input_forward(const_param, x, use_pallas=True)
    )
    assert out.shape == ref.shape
    assert out.dtype == jnp.float32
    assert jnp.array_equal(out, ref)

    # 2) Ragged last tile: batch=13 with an 8-row tile (8 + 5) to exercise the
    #    masked out-of-bounds writeback on the final grid step.
    x13 = jnp.zeros((13, channel, size, size), dtype=jnp.float32)
    out13 = jax.block_until_ready(
        constant_input_forward(const_param, x13, use_pallas=True, _tb_override=8)
    )
    ref13 = jnp.broadcast_to(const_param, (13, channel, size, size))
    assert jnp.array_equal(out13, ref13)

    # 3) Auto path: tiny output takes the XLA broadcast fast path (same result).
    out_auto = jax.block_until_ready(constant_input_forward(const_param, x))
    assert jnp.array_equal(out_auto, ref)

    print("KERNEL_OK")
</pallas_src>

<mosaic_0001>
module attributes {stable_mosaic.version = 11 : i64} {
  func.func @_constant_input_kernel(%arg0: i32, %arg1: memref<1x1024xf32, #tpu.memory_space<vmem>>, %arg2: memref<2x1024xf32, #tpu.memory_space<vmem>>) attributes {dimension_semantics = [#tpu.dimension_semantics<parallel>], iteration_bounds = array<i64: 1>, scalar_prefetch = 0 : i64, scratch_operands = 0 : i64, tpu.core_type = #tpu.core_type<tc>, window_params = [{pipeline_mode = #tpu.pipeline_mode<synchronous>, transform_indices = @transform_0, window_bounds = array<i64: 1, 1024>}, {transform_indices = @transform_1, window_bounds = array<i64: 2, 1024>}]} {
    %c0 = arith.constant 0 : index
    %c0_0 = arith.constant 0 : index
    %0 = vector.load %arg1[%c0, %c0_0] : memref<1x1024xf32, #tpu.memory_space<vmem>>, vector<1x1024xf32>
    %1 = vector.shape_cast %0 : vector<1x1024xf32> to vector<1x1024xf32>
    %2 = vector.broadcast %1 : vector<1x1024xf32> to vector<2x1024xf32>
    %c0_1 = arith.constant 0 : index
    %c0_2 = arith.constant 0 : index
    %3 = vector.load %arg2[%c0_1, %c0_2] : memref<2x1024xf32, #tpu.memory_space<vmem>>, vector<2x1024xf32>
    tpu.vector_store %arg2[%c0_1, %c0_2], %2 {strides = array<i32>} : memref<2x1024xf32, #tpu.memory_space<vmem>>, vector<2x1024xf32>,
    return
  }
  func.func @transform_0(%arg0: i32) -> (i32, i32) {
    %c0_i32 = arith.constant 0 : i32
    %c0_i32_0 = arith.constant 0 : i32
    %c0_i32_1 = arith.constant 0 : i32
    return %c0_i32, %c0_i32_0 : i32, i32
  }
  func.func @transform_1(%arg0: i32) -> (i32, i32) {
    %c0_i32 = arith.constant 0 : i32
    %c0_i32_0 = arith.constant 0 : i32
    return %arg0, %c0_i32 : i32, i32
  }
}

</mosaic_0001>

<bundles_post_ra>
// kernel: tpu_custom_call.1
= control target key start
LH: loop header
LB: loop body
LE: loop exit
PB: predicated region body
PF: predicated region fallthrough
CT: control target
= control target key end

     0   :  { %6 = vsyncpa [#allocation3], 0  ;;  %s145_s0 = inlined_call_operand.hbm [shape: f32[1,1024], index: 0, kind: input, shape index: {}]   ;;  %s146_s1 = inlined_call_operand.hbm [shape: f32[2,1024], index: 1, kind: output, shape index: {}]  }
   0x1   :  { %7 = vsyncpa [#allocation4], 0  ;;  %s13_s8 = sshll.u32 %s145_s0, 4  ;;  %s123_s9 = smov [#allocation2]   ;;  %s14_s8 = int_to_ptr.hbm [resolvable:$true] %s13_s8 }
   0x2   :  { %s15_s10 = sshll.u32 %s123_s9, 4  ;;  %s16_s10 = int_to_ptr.vmem [resolvable:$true] %s15_s10 }
   0x3   :  { %18 = dma.hbm_to_vmem [thread:$0]  %s14_s8, 128, %s16_s10, [#allocation3]  }
   0x4   :  { %119 = dma.done.wait [#allocation3], 128  }
   0x5   :  { %120 = vsyncadd [#allocation3], 4294967168  ;;  %v23_v0 = vld [vmem:[#allocation2] sm:$0xff]  ;;  %vm39_vm0 = vcmask 1041408   ;;  %vm41_vm1 = vcmask 1045508   ;;  %vm43_vm2 = vcmask 1043456  }
   0x6   :  { %v25_v1 = vperm.slane %v23_v0, 0  ;;  %v26_v2 = vperm.slane %v23_v0, 1  ;;  %v27_v3 = vperm.slane %v23_v0, 2  ;;  %v28_v4 = vperm.slane %v23_v0, 3  ;;  %s124_s0 = smov [#allocation5]   ;;  %s59_s14 = sshll.u32 %s146_s1, 4  ;;  %s60_s14 = int_to_ptr.hbm [resolvable:$true] %s59_s14 }
   0x7   :  { %v29_v5 = vperm.slane %v23_v0, 4  ;;  %v30_v6 = vperm.slane %v23_v0, 5  ;;  %v31_v7 = vperm.slane %v23_v0, 6  ;;  %v32_v8 = vperm.slane %v23_v0, 7  ;;  %s57_s11 = sshll.u32 %s124_s0, 4  ;;  %s58_s11 = int_to_ptr.vmem [resolvable:$true] %s57_s11 }
   0x8   :  { %v33_v9 = vrot.slane %v26_v2, 6  ;;  %v34_v10 = vrot.slane %v27_v3, 4  ;;  %v35_v11 = vrot.slane %v28_v4, 2 }
   0x9   :  { %v36_v12 = vrot.slane %v30_v6, 6  ;;  %v37_v13 = vrot.slane %v31_v7, 4  ;;  %v38_v14 = vrot.slane %v32_v8, 2 }
   0xa   :  { %v40_v15 = vsel %vm39_vm0, %v25_v1, %v33_v9  ;;  %v42_v16 = vsel %vm41_vm1, %v34_v10, %v35_v11 }
   0xb   :  { %v44_v17 = vsel %vm43_vm2, %v40_v15, %v42_v16  ;;  %v45_v18 = vsel %vm39_vm0, %v29_v5, %v36_v12  ;;  %v46_v19 = vsel %vm41_vm1, %v37_v13, %v38_v14 }
   0xc   :  { %50 = vst [vmem:[#allocation5] sm:$0xff] %v44_v17  ;;  %v47_v20 = vsel %vm43_vm2, %v45_v18, %v46_v19 }
   0xd   :  { %51 = vst [vmem:[#allocation5 + $0x8] sm:$0xff] %v47_v20 }
   0xe   :  { %62 = dma.vmem_to_hbm [thread:$0]  %s58_s11, 256, %s60_s14, [#allocation4]  }
   0xf   :  { %121 = dma.done.wait [#allocation4], 256  }
  0x10   :  { %122 = vsyncadd [#allocation4], 4294967040 }
  0x11   :  { %67 = vsyncpa [#allocation3], 1 }
  0x12   :  { %68 = vsyncpa [#allocation4], 1 }

</bundles_post_ra>
